<compile_context>
chip_gen: v6e
topology: v6e:2x2x1
jax: 0.10.0
libtpu: 0.0.40
codegen_flags: <defaults>
</compile_context>

<pallas_src>
import math

import jax
import jax.numpy as jnp
from jax.experimental import pallas as pl
from jax.experimental.pallas import tpu as pltpu


def _round_up(n, m):
    return (n + m - 1) // m * m


def _pad2d(a, rows, cols):
    r, c = a.shape
    if r == rows and c == cols:
        return a
    return jnp.pad(a, ((0, rows - r), (0, cols - c)))


def ffnn_kernel(x_ref, w1_ref, b1_ref, w2_ref, b2_ref, w3t_ref, b3_ref, o_ref):
    # x_ref: (TM, F_pad) bf16 row tile; weights/biases are resident across grid steps.
    x = x_ref[...]

    # L_1 + ReLU (head activation 'R'): bf16 MXU operands, f32 accumulation.
    h1 = jnp.dot(x, w1_ref[...], preferred_element_type=jnp.float32) + b1_ref[...]
    h1 = jnp.maximum(h1, 0.0)

    # DR_2 (Dropout p=0.01): identity in eval/inference mode.
    # TODO(synk): training-mode dropout (stochastic masking via pltpu.prng_*) not implemented.

    # L_2 + ReLU (hidden activation 'R').
    h2 = jnp.dot(h1.astype(jnp.bfloat16), w2_ref[...],
                 preferred_element_type=jnp.float32) + b2_ref[...]
    h2 = jnp.maximum(h2, 0.0)

    # L_3 (out_dim == 1) + Sigmoid (tail activation 'S').
    # Computed as VPU multiply + XLU lane-reduction instead of an MXU (H x 1) matvec:
    # avoids wasting an MXU pass on a 1-wide RHS; the (TM, 1) store is negligible traffic.
    z = jnp.sum(h2 * w3t_ref[...], axis=-1, keepdims=True) + b3_ref[...]

    # Exact sigmoid keeps outputs strictly inside [0, 1]; exp runs on the EUP slot.
    o_ref[...] = (1.0 / (1.0 + jnp.exp(-z))).astype(o_ref.dtype)


def ffnns_forward(x, params, *, tm=512):
    """x: [batch, ranking_size, num_features] -> [batch, ranking_size, 1]."""
    w1, b1, w2, b2, w3, b3 = params
    B, R, F = x.shape
    H = w1.shape[1]
    out_dim = w3.shape[1]
    assert out_dim == 1, "FFNNs forward contract is [batch, ranking_size, 1]"
    # TODO(synk): general out_dim > 1 would use a third MXU matmul with a lane-padded w3.

    M = B * R
    F_pad = _round_up(F, 128)
    H_pad = _round_up(H, 128)
    TM = min(tm, _round_up(M, 16))          # row tile, sublane-aligned for bf16
    M_pad = _round_up(M, TM)

    # Pad to lane/sublane-aligned shapes; matmul operands cast to bf16 (zero padding keeps
    # the padded features/hidden units inert through every layer).
    x2d = _pad2d(x.reshape(M, F), M_pad, F_pad).astype(jnp.bfloat16)
    w1p = _pad2d(w1, F_pad, H_pad).astype(jnp.bfloat16)
    w2p = _pad2d(w2, H_pad, H_pad).astype(jnp.bfloat16)
    b1p = _pad2d(b1, 1, H_pad).astype(jnp.float32)
    b2p = _pad2d(b2, 1, H_pad).astype(jnp.float32)
    w3t = _pad2d(w3, H_pad, 1).T.astype(jnp.float32)   # (1, H_pad), used on the VPU in f32
    b3p = b3.astype(jnp.float32)                       # (1, 1)

    grid = (M_pad // TM,)
    const = lambda i: (0, 0)  # weights/biases: same block every step -> stay VMEM-resident

    out2d = pl.pallas_call(
        ffnn_kernel,
        out_shape=jax.ShapeDtypeStruct((M_pad, 1), x.dtype),
        grid_spec=pltpu.PrefetchScalarGridSpec(
            num_scalar_prefetch=0,
            grid=grid,
            in_specs=[
                pl.BlockSpec((TM, F_pad), lambda i: (i, 0)),   # streamed x row tile
                pl.BlockSpec((F_pad, H_pad), const),           # w1
                pl.BlockSpec((1, H_pad), const),               # b1
                pl.BlockSpec((H_pad, H_pad), const),           # w2
                pl.BlockSpec((1, H_pad), const),               # b2
                pl.BlockSpec((1, H_pad), const),               # w3^T
                pl.BlockSpec((1, 1), const),                   # b3
            ],
            out_specs=pl.BlockSpec((TM, 1), lambda i: (i, 0)),
        ),
        # Rows are independent -> shard the grid across v7x's 2 TensorCores
        # (harmless no-op on v5e/v6e). VMEM footprint at TM=512 with F/H padded to 128
        # is ~1 MiB (double-buffered x tile + resident weights + f32 intermediates),
        # well under v7x's 32 MiB scoped default, so no vmem_limit override is needed.
        compiler_params=pltpu.CompilerParams(dimension_semantics=("parallel",)),
    )(x2d, w1p, b1p, w2p, b2p, w3t, b3p)

    return out2d[:M].reshape(B, R, out_dim)


def init_params(key, num_features, h_dim, out_dim):
    """Deterministic init matching the PyTorch module's shapes.

    Weights: xavier_normal_ (std = sqrt(2/(fan_in+fan_out))).
    Biases:  PyTorch Linear default, uniform(-1/sqrt(fan_in), 1/sqrt(fan_in)).
    Weights are stored already transposed as (in, out) so the kernel does x @ W.
    """
    keys = jax.random.split(key, 6)

    def xavier(k, fan_in, fan_out):
        std = math.sqrt(2.0 / (fan_in + fan_out))
        return jax.random.normal(k, (fan_in, fan_out), jnp.float32) * std

    def bias(k, fan_in, fan_out):
        bound = 1.0 / math.sqrt(fan_in)
        return jax.random.uniform(k, (1, fan_out), jnp.float32, -bound, bound)

    w1 = xavier(keys[0], num_features, h_dim)
    b1 = bias(keys[1], num_features, h_dim)
    w2 = xavier(keys[2], h_dim, h_dim)
    b2 = bias(keys[3], h_dim, h_dim)
    w3 = xavier(keys[4], h_dim, out_dim)
    b3 = bias(keys[5], h_dim, out_dim)
    return (w1, b1, w2, b2, w3, b3)


if __name__ == "__main__":
    # Small shapes consistent with forward(): x is [batch, ranking_size, num_features]
    batch, ranking_size, num_features = 2, 8, 32
    h_dim, out_dim = 32, 1

    key = jax.random.PRNGKey(0)
    k_x, k_p = jax.random.split(key)
    x = jax.random.normal(k_x, (batch, ranking_size, num_features), jnp.float32)
    params = init_params(k_p, num_features, h_dim, out_dim)

    out = ffnns_forward(x, params)
    jax.block_until_ready(out)

    assert out.shape == (batch, ranking_size, out_dim)
    assert bool(jnp.all(jnp.isfinite(out)))
    assert bool(jnp.all((out >= 0.0) & (out <= 1.0)))  # sigmoid tail activation
    print("KERNEL_OK")
</pallas_src>

<mosaic_0001>
module attributes {stable_mosaic.version = 11 : i64} {
  func.func @ffnn_kernel(%arg0: i32, %arg1: memref<16x128xbf16, #tpu.memory_space<vmem>>, %arg2: memref<128x128xbf16, #tpu.memory_space<vmem>>, %arg3: memref<1x128xf32, #tpu.memory_space<vmem>>, %arg4: memref<128x128xbf16, #tpu.memory_space<vmem>>, %arg5: memref<1x128xf32, #tpu.memory_space<vmem>>, %arg6: memref<1x128xf32, #tpu.memory_space<vmem>>, %arg7: memref<1x1xf32, #tpu.memory_space<vmem>>, %arg8: memref<16x1xf32, #tpu.memory_space<vmem>>) attributes {dimension_semantics = [#tpu.dimension_semantics<parallel>], iteration_bounds = array<i64: 1>, scalar_prefetch = 0 : i64, scratch_operands = 0 : i64, tpu.core_type = #tpu.core_type<tc>, window_params = [{transform_indices = @transform_0, window_bounds = array<i64: 16, 128>}, {pipeline_mode = #tpu.pipeline_mode<synchronous>, transform_indices = @transform_1, window_bounds = array<i64: 128, 128>}, {pipeline_mode = #tpu.pipeline_mode<synchronous>, transform_indices = @transform_2, window_bounds = array<i64: 1, 128>}, {pipeline_mode = #tpu.pipeline_mode<synchronous>, transform_indices = @transform_3, window_bounds = array<i64: 128, 128>}, {pipeline_mode = #tpu.pipeline_mode<synchronous>, transform_indices = @transform_4, window_bounds = array<i64: 1, 128>}, {pipeline_mode = #tpu.pipeline_mode<synchronous>, transform_indices = @transform_5, window_bounds = array<i64: 1, 128>}, {pipeline_mode = #tpu.pipeline_mode<synchronous>, transform_indices = @transform_6, window_bounds = array<i64: 1, 1>}, {transform_indices = @transform_7, window_bounds = array<i64: 16, 1>}]} {
    %c0 = arith.constant 0 : index
    %c0_0 = arith.constant 0 : index
    %0 = vector.load %arg1[%c0, %c0_0] : memref<16x128xbf16, #tpu.memory_space<vmem>>, vector<16x128xbf16>
    %c0_1 = arith.constant 0 : index
    %c0_2 = arith.constant 0 : index
    %1 = vector.load %arg2[%c0_1, %c0_2] : memref<128x128xbf16, #tpu.memory_space<vmem>>, vector<128x128xbf16>
    %cst = arith.constant dense<0.000000e+00> : vector<16x128xf32>
    %2 = tpu.matmul %0, %1, %cst {dimension_numbers = #tpu.dot_dimension_numbers<[1], [0], [0], [1], [0, 0, 1, 1], [], []>} : vector<16x128xbf16>, vector<128x128xbf16>, vector<16x128xf32> -> vector<16x128xf32>
    %c0_3 = arith.constant 0 : index
    %c0_4 = arith.constant 0 : index
    %3 = vector.load %arg3[%c0_3, %c0_4] : memref<1x128xf32, #tpu.memory_space<vmem>>, vector<1x128xf32>
    %4 = vector.broadcast %3 : vector<1x128xf32> to vector<16x128xf32>
    %5 = arith.addf %2, %4 : vector<16x128xf32>
    %cst_5 = arith.constant 0.000000e+00 : f32
    %6 = vector.broadcast %cst_5 : f32 to vector<16x128xf32>
    %7 = arith.maximumf %5, %6 : vector<16x128xf32>
    %8 = arith.truncf %7 : vector<16x128xf32> to vector<16x128xbf16>
    %c0_6 = arith.constant 0 : index
    %c0_7 = arith.constant 0 : index
    %9 = vector.load %arg4[%c0_6, %c0_7] : memref<128x128xbf16, #tpu.memory_space<vmem>>, vector<128x128xbf16>
    %cst_8 = arith.constant dense<0.000000e+00> : vector<16x128xf32>
    %10 = tpu.matmul %8, %9, %cst_8 {dimension_numbers = #tpu.dot_dimension_numbers<[1], [0], [0], [1], [0, 0, 1, 1], [], []>} : vector<16x128xbf16>, vector<128x128xbf16>, vector<16x128xf32> -> vector<16x128xf32>
    %c0_9 = arith.constant 0 : index
    %c0_10 = arith.constant 0 : index
    %11 = vector.load %arg5[%c0_9, %c0_10] : memref<1x128xf32, #tpu.memory_space<vmem>>, vector<1x128xf32>
    %12 = vector.broadcast %11 : vector<1x128xf32> to vector<16x128xf32>
    %13 = arith.addf %10, %12 : vector<16x128xf32>
    %cst_11 = arith.constant 0.000000e+00 : f32
    %14 = vector.broadcast %cst_11 : f32 to vector<16x128xf32>
    %15 = arith.maximumf %13, %14 : vector<16x128xf32>
    %c0_12 = arith.constant 0 : index
    %c0_13 = arith.constant 0 : index
    %16 = vector.load %arg6[%c0_12, %c0_13] : memref<1x128xf32, #tpu.memory_space<vmem>>, vector<1x128xf32>
    %17 = vector.broadcast %16 : vector<1x128xf32> to vector<16x128xf32>
    %18 = arith.mulf %15, %17 : vector<16x128xf32>
    %cst_14 = arith.constant dense<0.000000e+00> : vector<16xf32>
    %19 = vector.multi_reduction <add>, %18, %cst_14 [1] : vector<16x128xf32> to vector<16xf32>
    %20 = vector.shape_cast %19 : vector<16xf32> to vector<16x1xf32>
    %c0_15 = arith.constant 0 : index
    %c0_16 = arith.constant 0 : index
    %21 = vector.load %arg7[%c0_15, %c0_16] : memref<1x1xf32, #tpu.memory_space<vmem>>, vector<1x1xf32>
    %22 = vector.broadcast %21 : vector<1x1xf32> to vector<16x1xf32>
    %23 = arith.addf %20, %22 : vector<16x1xf32>
    %cst_17 = arith.constant 0.000000e+00 : f32
    %24 = vector.broadcast %cst_17 : f32 to vector<16x1xf32>
    %25 = arith.subf %24, %23 : vector<16x1xf32>
    %26 = math.exp %25 : vector<16x1xf32>
    %cst_18 = arith.constant 1.000000e+00 : f32
    %27 = vector.broadcast %cst_18 : f32 to vector<16x1xf32>
    %28 = arith.addf %27, %26 : vector<16x1xf32>
    %cst_19 = arith.constant 1.000000e+00 : f32
    %29 = vector.broadcast %cst_19 : f32 to vector<16x1xf32>
    %30 = arith.divf %29, %28 : vector<16x1xf32>
    %c0_20 = arith.constant 0 : index
    %c0_21 = arith.constant 0 : index
    %31 = vector.load %arg8[%c0_20, %c0_21] : memref<16x1xf32, #tpu.memory_space<vmem>>, vector<16x1xf32>
    tpu.vector_store %arg8[%c0_20, %c0_21], %30 {strides = array<i32>} : memref<16x1xf32, #tpu.memory_space<vmem>>, vector<16x1xf32>,
    return
  }
  func.func @transform_0(%arg0: i32) -> (i32, i32) {
    %c0_i32 = arith.constant 0 : i32
    %c0_i32_0 = arith.constant 0 : i32
    return %arg0, %c0_i32 : i32, i32
  }
  func.func @transform_1(%arg0: i32) -> (i32, i32) {
    %c0_i32 = arith.constant 0 : i32
    %c0_i32_0 = arith.constant 0 : i32
    %c0_i32_1 = arith.constant 0 : i32
    return %c0_i32, %c0_i32_0 : i32, i32
  }
  func.func @transform_2(%arg0: i32) -> (i32, i32) {
    %c0_i32 = arith.constant 0 : i32
    %c0_i32_0 = arith.constant 0 : i32
    %c0_i32_1 = arith.constant 0 : i32
    return %c0_i32, %c0_i32_0 : i32, i32
  }
  func.func @transform_3(%arg0: i32) -> (i32, i32) {
    %c0_i32 = arith.constant 0 : i32
    %c0_i32_0 = arith.constant 0 : i32
    %c0_i32_1 = arith.constant 0 : i32
    return %c0_i32, %c0_i32_0 : i32, i32
  }
  func.func @transform_4(%arg0: i32) -> (i32, i32) {
    %c0_i32 = arith.constant 0 : i32
    %c0_i32_0 = arith.constant 0 : i32
    %c0_i32_1 = arith.constant 0 : i32
    return %c0_i32, %c0_i32_0 : i32, i32
  }
  func.func @transform_5(%arg0: i32) -> (i32, i32) {
    %c0_i32 = arith.constant 0 : i32
    %c0_i32_0 = arith.constant 0 : i32
    %c0_i32_1 = arith.constant 0 : i32
    return %c0_i32, %c0_i32_0 : i32, i32
  }
  func.func @transform_6(%arg0: i32) -> (i32, i32) {
    %c0_i32 = arith.constant 0 : i32
    %c0_i32_0 = arith.constant 0 : i32
    %c0_i32_1 = arith.constant 0 : i32
    return %c0_i32, %c0_i32_0 : i32, i32
  }
  func.func @transform_7(%arg0: i32) -> (i32, i32) {
    %c0_i32 = arith.constant 0 : i32
    %c0_i32_0 = arith.constant 0 : i32
    return %arg0, %c0_i32 : i32, i32
  }
}

</mosaic_0001>

<bundles_post_ra>
// kernel: tpu_custom_call.1
= control target key start
LH: loop header
LB: loop body
LE: loop exit
PB: predicated region body
PF: predicated region fallthrough
CT: control target
= control target key end

     0   :  { %s599_s0 = inlined_call_operand.hbm [shape: bf16[16,128], index: 0, kind: input, shape index: {}]   ;;  %s600_s1 = inlined_call_operand.hbm [shape: bf16[128,128], index: 1, kind: input, shape index: {}]   ;;  %s601_s2 = inlined_call_operand.vmem [shape: f32[1,128], index: 2, kind: input, shape index: {}]   ;;  %s602_s3 = inlined_call_operand.hbm [shape: bf16[128,128], index: 3, kind: input, shape index: {}]   ;;  %s603_s4 = inlined_call_operand.vmem [shape: f32[1,128], index: 4, kind: input, shape index: {}]   ;;  %s604_s5 = inlined_call_operand.vmem [shape: f32[1,128], index: 5, kind: input, shape index: {}]   ;;  %s605_s6 = inlined_call_operand.<no memory space> [shape: f32[1,1], index: 6, kind: input, shape index: {}]   ;;  %s606_s7 = inlined_call_operand.vmem [shape: f32[16,1], index: 7, kind: output, shape index: {}]  }
   0x1   :  { %v12_v0 = vstv %s605_s6 }
   0x2   :  { %13 = vst [vmem:[#allocation2] sm:$0x1] %v12_v0 }
   0x3   :  { %14 = vsyncpa [#allocation4], 0 }
   0x4   :  { %15 = vsyncpa [#allocation6], 0  ;;  %s525_s26 = smov [#allocation5]   ;;  %s526_s28 = smov [#allocation3]  }
   0x5   :  { %s33_s27 = sshll.u32 %s525_s26, 4  ;;  %s21_s29 = sshll.u32 %s526_s28, 4  ;;  %s34_s27 = int_to_ptr.vmem [resolvable:$true] %s33_s27  ;;  %s22_s29 = int_to_ptr.vmem [resolvable:$true] %s21_s29 }
   0x6   :  { %s469_s30 = scalar_lea.vmem %s34_s27, 1024  ;;  %p474_p1 = scmp.lt.s32.totalorder %s34_s27, %s34_s27 }
   0x7   :  { %p470_p0 = scmp.ne.s32.totalorder %s34_s27, %s469_s30  ;;  %p475_p2 = scmp.lt.s32.totalorder %s469_s30, %s469_s30 }
   0x9   :  { %p476_p3 = por %p475_p2, %p474_p1 }
   0xb   :  { %p477_p4 = pnand %p476_p3, %p470_p0 }
   0xd   :  { %480 = shalt.err (!%p477_p4)
}
   0xe   :  { %s527_s8 = smov 64   ;;  %s528_s9 = smov 4  }
   0xf   :  { %39 = dma.hbm_to_vmem [thread:$0]  %s600_s1, 1024, %s34_s27, [#allocation6], %s527_s8, %s527_s8, %s528_s9  }
  0x10   :  { %s489_s11 = scalar_lea.vmem %s22_s29, 128  ;;  %p494_p6 = scmp.lt.s32.totalorder %s22_s29, %s22_s29 }
  0x11   :  { %p490_p5 = scmp.ne.s32.totalorder %s22_s29, %s489_s11  ;;  %p495_p7 = scmp.lt.s32.totalorder %s489_s11, %s489_s11 }
  0x13   :  { %p496_p8 = por %p495_p7, %p494_p6 }
  0x15   :  { %p497_p9 = pnand %p496_p8, %p490_p5 }
  0x17   :  { %500 = shalt.err (!%p497_p9)
}
  0x18   :  { %27 = dma.hbm_to_vmem [thread:$0]  %s599_s0, 128, %s22_s29, [#allocation4], %s527_s8, %s527_s8, %s528_s9  }
  0x19   :  { %s529_s14 = smov [#allocation7]  }
  0x1a   :  { %s47_s15 = sshll.u32 %s529_s14, 4  ;;  %s48_s15 = int_to_ptr.vmem [resolvable:$true] %s47_s15 }
  0x1b   :  { %s509_s16 = scalar_lea.vmem %s48_s15, 1024  ;;  %p514_p11 = scmp.lt.s32.totalorder %s48_s15, %s48_s15 }
  0x1c   :  { %p510_p10 = scmp.ne.s32.totalorder %s48_s15, %s509_s16  ;;  %p515_p12 = scmp.lt.s32.totalorder %s509_s16, %s509_s16 }
  0x1e   :  { %p516_p13 = por %p515_p12, %p514_p11 }
  0x20   :  { %p517_p0 = pnand %p516_p13, %p510_p10 }
  0x22   :  { %520 = shalt.err (!%p517_p0)
}
  0x23   :  { %53 = dma.hbm_to_vmem [thread:$0]  %s602_s3, 1024, %s48_s15, [#allocation6], %s527_s8, %s527_s8, %s528_s9  }
  0x24   :  { %521 = dma.done.wait [#allocation4], 128  }
  0x25   :  { %522 = vsyncadd [#allocation4], 4294967168 }
  0x26   :  { %523 = dma.done.wait [#allocation6], 2048  }
  0x27   :  { %524 = vsyncadd [#allocation6], 4294965248  ;;  %v530_v1 = vmov 0.0   ;;  %vm531_vm0 = vmmov 0   ;;  %v436_v2 = vld [vmem:[#allocation5 + $0x38] sm:$0xff]   ;;  %v437_v3 = vld [vmem:[#allocation5 + $0x30] sm:$0xff]  }
  0x28   :  { %389 = vmatprep.subr.bf16.mxu0 %v530_v1  ;;  %405 = vmatprep.mubr.msk.bf16.mxu0 %vm531_vm0, %v530_v1  ;;  %v438_v4 = vld [vmem:[#allocation5 + $0x28] sm:$0xff]   ;;  %v445_v5 = vld [vmem:[#allocation7 + $0x38] sm:$0xff]   ;;  %v439_v6 = vld [vmem:[#allocation5 + $0x20] sm:$0xff]   ;;  %vm341_vm1 = vcmask 7168  }
  0x29   :  { %409 = vmatprep.subr.bf16.mxu1 %v530_v1  ;;  %425 = vmatprep.mubr.msk.bf16.mxu1 %vm531_vm0, %v530_v1  ;;  %v446_v7 = vld [vmem:[#allocation7 + $0x30] sm:$0xff]   ;;  %v440_v8 = vld [vmem:[#allocation5 + $0x18] sm:$0xff]   ;;  %v447_v9 = vld [vmem:[#allocation7 + $0x28] sm:$0xff]  }
  0x2a   :  { %390 = vmatpush3.bf16.msra.mxu0 %v436_v2  ;;  %410 = vmatpush3.bf16.msra.mxu1 %v445_v5  ;;  %v441_v10 = vld [vmem:[#allocation5 + $0x10] sm:$0xff]   ;;  %v448_v11 = vld [vmem:[#allocation7 + $0x20] sm:$0xff]   ;;  %v442_v12 = vld [vmem:[#allocation5 + $0x8] sm:$0xff]  }
  0x2b   :  { %391 = vmatprep.subr.bf16.mxu0 %v530_v1  ;;  %411 = vmatprep.subr.bf16.mxu1 %v530_v1  ;;  %v449_v13 = vld [vmem:[#allocation7 + $0x18] sm:$0xff]   ;;  %v443_v14 = vld [vmem:[#allocation5] sm:$0xff]   ;;  %v450_v16 = vld [vmem:[#allocation7 + $0x10] sm:$0xff]  }
  0x2c   :  { %v444_v15 = vld [vmem:[#allocation3] sm:$0xff]   ;;  %v451_v17 = vld [vmem:[#allocation7 + $0x8] sm:$0xff]   ;;  %v452_v18 = vld [vmem:[#allocation7] sm:$0xff]  }
  0x2d   :  { %v350_v19 = vld [vmem:[%s601_s2] ss:$0 sm:$0xff] }
  0x2e   :  { %392 = vmatpush3.bf16.msra.mxu0 %v437_v3  ;;  %412 = vmatpush3.bf16.msra.mxu1 %v446_v7  ;;  %v360_v29 = vld [vmem:[%s603_s4] ss:$0 sm:$0xff] }
  0x2f   :  { %393 = vmatprep.subr.bf16.mxu0 %v530_v1  ;;  %413 = vmatprep.subr.bf16.mxu1 %v530_v1  ;;  %v369_v33 = vld [vmem:[%s604_s5] ss:$0 sm:$0xff] }
  0x30   :  { %v370_v41 = vld [vmem:[#allocation2] ss:$0 sm:$0xff] }
  0x32   :  { %394 = vmatpush3.bf16.msra.mxu0 %v438_v4  ;;  %414 = vmatpush3.bf16.msra.mxu1 %v447_v9 }
  0x33   :  { %395 = vmatprep.subr.bf16.mxu0 %v530_v1  ;;  %415 = vmatprep.subr.bf16.mxu1 %v530_v1 }
  0x36   :  { %396 = vmatpush3.bf16.msra.mxu0 %v439_v6  ;;  %416 = vmatpush3.bf16.msra.mxu1 %v448_v11 }
  0x37   :  { %397 = vmatprep.subr.bf16.mxu0 %v530_v1  ;;  %417 = vmatprep.subr.bf16.mxu1 %v530_v1 }
  0x3a   :  { %398 = vmatpush3.bf16.msra.mxu0 %v440_v8  ;;  %418 = vmatpush3.bf16.msra.mxu1 %v449_v13 }
  0x3b   :  { %399 = vmatprep.subr.bf16.mxu0 %v530_v1  ;;  %419 = vmatprep.subr.bf16.mxu1 %v530_v1 }
  0x3e   :  { %400 = vmatpush3.bf16.msra.mxu0 %v441_v10  ;;  %420 = vmatpush3.bf16.msra.mxu1 %v450_v16 }
  0x3f   :  { %401 = vmatprep.subr.bf16.mxu0 %v530_v1  ;;  %421 = vmatprep.subr.bf16.mxu1 %v530_v1 }
  0x42   :  { %402 = vmatpush3.bf16.msra.mxu0 %v442_v12  ;;  %422 = vmatpush3.bf16.msra.mxu1 %v451_v17 }
  0x43   :  { %403 = vmatprep.subr.bf16.mxu0 %v530_v1  ;;  %423 = vmatprep.subr.bf16.mxu1 %v530_v1 }
  0x46   :  { %404 = vmatpush3.bf16.msra.mxu0 %v443_v14  ;;  %424 = vmatpush3.bf16.msra.mxu1 %v452_v18 }
  0x49   :  { %406 = vmatmul.mubr.bf16.vlgmr.msra.gmra.mxu0 %v444_v15 }
 0x109   :  { %v183_v20 = vpop.f32.mrf.mxu0 }
 0x10a   :  { %v184_v22 = vadd.f32 %v350_v19, %v183_v20 }
 0x10b   :  { %v407_v21 = vpop.f32.mrf.mxu0 }
 0x10c   :  { %v190_v26 = vmax.f32 %v184_v22, 0.0 }
 0x10d   :  { %v186_v23 = vpop.f32.mrf.mxu0 }
 0x10e   :  { %v187_v24 = vadd.f32 %v350_v19, %v186_v23 }
 0x10f   :  { %v408_v25 = vpop.f32.mrf.mxu0 }
 0x110   :  { %v191_v27 = vmax.f32 %v187_v24, 0.0 }
 0x112   :  { %v192_v28 = vpack.c.bf16 %v191_v27, %v190_v26 }
 0x114   :  { %426 = vmatmul.mubr.bf16.vlgmr.msra.gmra.mxu1 %v192_v28 }
 0x1d4   :  { %v298_v30 = vpop.f32.mrf.mxu1 }
 0x1d5   :  { %v299_v31 = vadd.f32 %v360_v29, %v298_v30 }
 0x1d6   :  { %v427_v32 = vpop.f32.mrf.mxu1 }
 0x1d7   :  { %v305_v34 = vmax.f32 %v299_v31, 0.0 }
 0x1d8   :  { %v301_v35 = vpop.f32.mrf.mxu1 }
 0x1d9   :  { %v302_v36 = vadd.f32 %v360_v29, %v301_v35  ;;  %v314_v37 = vmul.f32 %v369_v33, %v305_v34 }
 0x1da   :  { %v428_v38 = vpop.f32.mrf.mxu1 }
 0x1db   :  { %v306_v39 = vmax.f32 %v302_v36, 0.0  ;;  %316 = vadd.xlane.f32.xlu0 %v314_v37 }
 0x1dd   :  { %v315_v40 = vmul.f32 %v369_v33, %v306_v39 }
 0x1df   :  { %318 = vadd.xlane.f32.xlu0 %v315_v40 }
 0x264   :  { %v317_v42 = vpop.xlane.xlu0 %316 }
 0x265   :  { %v327_v43 = vadd.f32 %v370_v41, %v317_v42 }
 0x267   :  { %v329_v44 = vsub.f32 0.0, %v327_v43 }
 0x268   :  { %v319_v45 = vpop.xlane.xlu0 %318 }
 0x269   :  { %v331_v46 = vmul.f32 1.442695, %v329_v44  ;;  %v328_v47 = vadd.f32 %v370_v41, %v319_v45 }
 0x26b   :  { %453 = vpow2.f32 %v331_v46  ;;  %v330_v48 = vsub.f32 0.0, %v328_v47 }
 0x26d   :  { %v333_v49 = vmul.f32 1.442695, %v330_v48 }
 0x26f   :  { %455 = vpow2.f32 %v333_v49 }
 0x278   :  { %v454_v50 = vpop.eup %453 }
 0x279   :  { %v335_v51 = vadd.f32 1.0, %v454_v50 }
 0x27b   :  { %457 = vrcp.f32 %v335_v51 }
 0x27c   :  { %v456_v52 = vpop.eup %455 }
 0x27d   :  { %v336_v53 = vadd.f32 1.0, %v456_v52 }
 0x27f   :  { %459 = vrcp.f32 %v336_v53 }
 0x288   :  { %v458_v54 = vpop.eup %457 }
 0x289   :  { %342 = vst.msk [vmem:[%s606_s7] sm:$0xff] %vm341_vm1, %v458_v54 }
 0x28c   :  { %v460_v55 = vpop.eup %459 }
 0x28d   :  { %343 = vst.msk [vmem:[%s606_s7 + $0x8] sm:$0xff] %vm341_vm1, %v460_v55 }
 0x28e   :  { %348 = vsyncpa [#allocation4], 1 }
 0x28f   :  { %349 = vsyncpa [#allocation6], 1 }

</bundles_post_ra>
